<compile_context>
chip_gen: v5e
topology: v5e:2x2
jax: 0.10.0
libtpu: 0.0.40
codegen_flags: <defaults>
</compile_context>

<pallas_src>
import functools
import numpy as np
import jax
import jax.numpy as jnp
from jax.experimental import pallas as pl
from jax.experimental.pallas import tpu as pltpu

_MiB = 1024 * 1024

# Activations that are purely elementwise -> safe to fuse into the GEMM
# epilogue (masked / out-of-bounds lanes can never contaminate valid outputs).
_ELEMENTWISE_ACTIVATIONS = frozenset({
    "relu", "relu6", "sigmoid", "tanh", "softplus", "soft_sign", "softsign",
    "silu", "swish", "elu", "celu", "selu", "gelu", "leaky_relu",
    "hard_sigmoid", "hard_silu", "hard_swish", "hard_tanh", "hardtanh",
    "log_sigmoid", "mish", "squareplus",
})


def _round_up(x, m):
    return (x + m - 1) // m * m


def _cdiv(a, b):
    return (a + b - 1) // b


def _vmem_capacity_bytes():
    try:
        return int(pltpu.get_tpu_info().vmem_capacity_bytes)
    except Exception:
        return 64 * _MiB  # conservative: v7x per-TensorCore physical VMEM


def _fc_direct_kernel(*refs, has_bias, nonlinearity, compute_dtype):
    """Single-K-step FC tile: o = act(x @ w + b). No accumulator scratch."""
    if has_bias:
        x_ref, w_ref, b_ref, o_ref = refs
    else:
        x_ref, w_ref, o_ref = refs
        b_ref = None
    x = x_ref[...]
    if compute_dtype is not None and x.dtype != compute_dtype:
        x = x.astype(compute_dtype)  # VPU cast, hidden under the MXU
    acc = jnp.dot(x, w_ref[...], preferred_element_type=jnp.float32)
    if b_ref is not None:
        acc = acc + b_ref[...].astype(jnp.float32)
    if nonlinearity is not None:
        acc = nonlinearity(acc)
    o_ref[...] = acc.astype(o_ref.dtype)


def _fc_acc_kernel(*refs, has_bias, nonlinearity, compute_dtype):
    """K-tiled FC with f32 VMEM accumulator; epilogue on the last K step."""
    if has_bias:
        x_ref, w_ref, b_ref, o_ref, acc_ref = refs
    else:
        x_ref, w_ref, o_ref, acc_ref = refs
        b_ref = None
    k = pl.program_id(2)

    @pl.when(k == 0)
    def _():
        acc_ref[...] = jnp.zeros_like(acc_ref)

    x = x_ref[...]
    if compute_dtype is not None and x.dtype != compute_dtype:
        x = x.astype(compute_dtype)
    acc_ref[...] += jnp.dot(x, w_ref[...], preferred_element_type=jnp.float32)

    @pl.when(k == pl.num_programs(2) - 1)
    def _():
        acc = acc_ref[...]
        if b_ref is not None:
            acc = acc + b_ref[...].astype(jnp.float32)
        if nonlinearity is not None:
            acc = nonlinearity(acc)
        o_ref[...] = acc.astype(o_ref.dtype)


def fc_layer(x, weight_t, bias=None, nonlinearity=None,
             nonlinearity_elementwise=True, compute_dtype=None,
             tm=None, tn=None, tk=None):
    """Pallas FC forward: y = nonlinearity(x @ weight_t + bias).

    x:        (M, In)
    weight_t: (In, H)  (nn.Linear weight, transposed; may be stored in bf16)
    bias:     (H,) / (1, H) or None
    compute_dtype: optional matmul dtype (e.g. jnp.bfloat16). x tiles are cast
        in-kernel; accumulation stays f32; output keeps x's dtype.
    """
    M, K = x.shape
    K2, N = weight_t.shape
    assert K == K2, (K, K2)
    out_dtype = x.dtype
    has_bias = bias is not None

    if compute_dtype is not None and weight_t.dtype != compute_dtype:
        weight_t = weight_t.astype(compute_dtype)  # weight is small; one-off

    in_b = jnp.dtype(x.dtype).itemsize
    w_b = jnp.dtype(weight_t.dtype).itemsize
    out_b = jnp.dtype(out_dtype).itemsize

    if has_bias:
        bias = jnp.asarray(bias, jnp.float32).reshape(1, -1)

    # Fuse only elementwise activations; row-wise / shape-changing ones are
    # applied outside the kernel (tile/mask boundaries would corrupt them).
    fuse_nl = nonlinearity is not None and nonlinearity_elementwise
    kernel_nl = nonlinearity if fuse_nl else None

    # bf16 packs two rows per sublane: prefer tm % 16 == 0 when it matters.
    row_align = 16 if (compute_dtype == jnp.bfloat16 and M >= 16) else 8

    vmem_cap = _vmem_capacity_bytes()
    big_vmem = vmem_cap >= 96 * _MiB  # v5e/v6e (128 MiB) vs v7x (64 MiB)

    weight_bytes = K * N * w_b
    resident = (weight_bytes <= 6 * _MiB) and tn is None and tk is None

    if resident:
        # ---- Fast path: weight (and bias) live in VMEM for the whole call ---
        per_row = K * in_b + N * out_b
        tile_target = 4 * _MiB
        tm_cap = max(row_align,
                     (tile_target // max(per_row, 1)) // row_align * row_align)
        tm_eff = tm if tm is not None else min(1024, tm_cap,
                                               _round_up(M, row_align))
        tm_eff = max(8, _round_up(tm_eff, 8))
        # Give both TensorCores (megacore / v7x) work when M allows it.
        if tm is None and M >= 2 * row_align:
            tm_eff = min(tm_eff, _round_up(_cdiv(M, 2), row_align))
        gm = _cdiv(M, tm_eff)

        operands = [x, weight_t]
        in_specs = [
            pl.BlockSpec((tm_eff, K), lambda i: (i, 0)),
            pl.BlockSpec((K, N), lambda i: (0, 0)),        # resident weight
        ]
        if has_bias:
            operands.append(bias)
            in_specs.append(pl.BlockSpec((1, N), lambda i: (0, 0)))
        out_specs = pl.BlockSpec((tm_eff, N), lambda i: (i, 0))
        grid = (gm,)
        scratch_shapes = []
        dim_sem = ("parallel",)
        kernel = functools.partial(_fc_direct_kernel, has_bias=has_bias,
                                   nonlinearity=kernel_nl,
                                   compute_dtype=compute_dtype)
        vmem_bytes = (2 * tm_eff * K * in_b        # x, double-buffered
                      + 2 * tm_eff * N * out_b     # y, double-buffered
                      + 2 * K * N * w_b            # weight (conservative 2x)
                      + (2 * N * 4 if has_bias else 0))
        bytes_accessed = (M * K * in_b + K * N * w_b + M * N * out_b
                          + (N * 4 if has_bias else 0))
    else:
        # ---- General tiled (M, N, K) path for big weights --------------------
        # M/N use cdiv grids (partial output blocks masked on store, no pads /
        # slices). Only the contraction axis K is zero-padded, to a multiple
        # of 128 that tk divides.
        tm_d, tn_d, tk_d = (512, 1024, 1024) if big_vmem else (256, 512, 512)

        tm_eff = tm if tm is not None else min(tm_d, _round_up(M, row_align))
        tm_eff = max(8, _round_up(tm_eff, 8))
        tn_eff = tn if tn is not None else min(tn_d, _round_up(N, 128))
        tn_eff = max(128, _round_up(tn_eff, 128))

        Kp = _round_up(K, 128)
        if tk is not None:
            tk_eff = max(128, _round_up(tk, 128))
            Kp = _round_up(Kp, tk_eff)
        elif Kp <= tk_d:
            tk_eff = Kp
        else:
            tk_eff = 128
            for cand in (tk_d, 512, 384, 256, 128):
                if cand <= tk_d and Kp % cand == 0:
                    tk_eff = cand
                    break

        if Kp != K:  # zero-pad the contraction axis only (correctness)
            x = jnp.pad(x, ((0, 0), (0, Kp - K)))
            weight_t = jnp.pad(weight_t, ((0, Kp - K), (0, 0)))

        gm, gn, gk = _cdiv(M, tm_eff), _cdiv(N, tn_eff), Kp // tk_eff

        operands = [x, weight_t]
        if gk == 1:
            # Single K step: no accumulator scratch, no acc->o copy.
            in_specs = [
                pl.BlockSpec((tm_eff, Kp), lambda i, j: (i, 0)),
                pl.BlockSpec((Kp, tn_eff), lambda i, j: (0, j)),
            ]
            if has_bias:
                operands.append(bias)
                in_specs.append(pl.BlockSpec((1, tn_eff), lambda i, j: (0, j)))
            out_specs = pl.BlockSpec((tm_eff, tn_eff), lambda i, j: (i, j))
            grid = (gm, gn)
            scratch_shapes = []
            dim_sem = ("parallel", "parallel")
            kernel = functools.partial(_fc_direct_kernel, has_bias=has_bias,
                                       nonlinearity=kernel_nl,
                                       compute_dtype=compute_dtype)
        else:
            in_specs = [
                pl.BlockSpec((tm_eff, tk_eff), lambda i, j, k: (i, k)),
                pl.BlockSpec((tk_eff, tn_eff), lambda i, j, k: (k, j)),
            ]
            if has_bias:
                operands.append(bias)
                in_specs.append(
                    pl.BlockSpec((1, tn_eff), lambda i, j, k: (0, j)))
            out_specs = pl.BlockSpec((tm_eff, tn_eff), lambda i, j, k: (i, j))
            grid = (gm, gn, gk)
            scratch_shapes = [pltpu.VMEM((tm_eff, tn_eff), jnp.float32)]
            dim_sem = ("parallel", "parallel", "arbitrary")
            kernel = functools.partial(_fc_acc_kernel, has_bias=has_bias,
                                       nonlinearity=kernel_nl,
                                       compute_dtype=compute_dtype)

        vmem_bytes = (2 * tm_eff * tk_eff * in_b
                      + 2 * tk_eff * tn_eff * w_b
                      + 2 * tm_eff * tn_eff * out_b
                      + (tm_eff * tn_eff * 4 if gk > 1 else 0)
                      + (2 * tn_eff * 4 if has_bias else 0))
        # Tiled schedule: x is re-read once per N tile, weight once per M tile.
        bytes_accessed = (M * Kp * in_b * gn + Kp * N * w_b * gm
                          + M * N * out_b + (N * 4 * gm if has_bias else 0))

    # vmem_bytes already models double buffering -> no extra 2x hedge; never
    # exceed physical capacity minus headroom (v7x: 64 MiB per TensorCore).
    vmem_limit = max(vmem_bytes + 2 * _MiB, 32 * _MiB)
    vmem_limit = int(min(vmem_limit, vmem_cap - 12 * _MiB))

    cost = pl.CostEstimate(
        flops=2 * M * K * N,
        transcendentals=(M * N if kernel_nl is not None else 0),
        bytes_accessed=int(bytes_accessed),
    )

    out = pl.pallas_call(
        kernel,
        out_shape=jax.ShapeDtypeStruct((M, N), out_dtype),
        grid_spec=pltpu.PrefetchScalarGridSpec(
            num_scalar_prefetch=0,
            grid=grid,
            in_specs=in_specs,
            out_specs=out_specs,
            scratch_shapes=scratch_shapes,
        ),
        compiler_params=pltpu.CompilerParams(
            dimension_semantics=dim_sem,
            vmem_limit_bytes=vmem_limit,
        ),
        cost_estimate=cost,
    )(*operands)

    if nonlinearity is not None and not fuse_nl:
        out = nonlinearity(out)  # row-wise / shape-changing activations
    return out


class FCLayerPallas:
    """JAX/Pallas equivalent of the PyTorch FCLayer module."""

    def __init__(self, input_size, hidden_size, bias=True, nonlinearity=None,
                 key=None, compute_dtype=None):
        self.input_size = input_size
        self.hidden_size = hidden_size
        self.has_bias = bias
        self.compute_dtype = compute_dtype
        if key is None:
            key = jax.random.PRNGKey(42)
        # nn.Linear weight is (hidden, input); init_hidden() fills it
        # uniform(-initrange, initrange) and zeros the bias.
        initrange = 1.0 / np.sqrt(input_size * hidden_size)
        w = jax.random.uniform(key, (hidden_size, input_size),
                               dtype=jnp.float32,
                               minval=-initrange, maxval=initrange)
        w_t = jnp.transpose(w)                                 # (In, H)
        # Persistent low-precision weights halve weight DMA on the MXU path.
        self.weight_t = (w_t.astype(compute_dtype)
                         if compute_dtype is not None else w_t)
        self.bias = (jnp.zeros((1, hidden_size), jnp.float32)
                     if bias else None)
        if nonlinearity:
            fn = (getattr(jax.nn, nonlinearity, None)
                  or getattr(jnp, nonlinearity, None))
            if fn is None:
                raise ValueError(f"unknown nonlinearity: {nonlinearity}")
            self.nonlinearity = fn
            self.nonlinearity_elementwise = (
                nonlinearity in _ELEMENTWISE_ACTIVATIONS)
        else:
            self.nonlinearity = None
            self.nonlinearity_elementwise = True

    def __call__(self, x):
        # Flatten leading dims to one fat M axis so the MXU sees a real GEMM
        # (matches nn.Linear handling of (..., In) inputs).
        lead = x.shape[:-1]
        x2 = x.reshape(-1, x.shape[-1])
        y = fc_layer(x2, self.weight_t, self.bias, self.nonlinearity,
                     nonlinearity_elementwise=self.nonlinearity_elementwise,
                     compute_dtype=self.compute_dtype)
        return y.reshape(*lead, self.hidden_size)


if __name__ == "__main__":
    key = jax.random.PRNGKey(0)
    kx, kw1, kw2, kw3, kg = jax.random.split(key, 5)

    batch, input_size, hidden_size = 8, 32, 64
    x = jax.random.normal(kx, (batch, input_size), dtype=jnp.float32)

    # 1) defaults: bias, no nonlinearity (weight-resident fast path, no padding)
    layer = FCLayerPallas(input_size, hidden_size, bias=True, nonlinearity=None,
                          key=kw1)
    y = jax.block_until_ready(layer(x))
    y_ref = x @ layer.weight_t + layer.bias
    np.testing.assert_allclose(np.asarray(y), np.asarray(y_ref),
                               rtol=1e-5, atol=1e-5)

    # 1b) leading batch dims are flattened to one M axis (nn.Linear semantics)
    y3d = jax.block_until_ready(layer(x.reshape(2, 4, input_size)))
    np.testing.assert_allclose(np.asarray(y3d).reshape(batch, hidden_size),
                               np.asarray(y), rtol=0, atol=0)

    # 2) fused elementwise nonlinearity (tanh)
    layer_nl = FCLayerPallas(input_size, hidden_size, bias=True,
                             nonlinearity="tanh", key=kw1)
    y2 = jax.block_until_ready(layer_nl(x))
    y2_ref = jnp.tanh(x @ layer_nl.weight_t + layer_nl.bias)
    np.testing.assert_allclose(np.asarray(y2), np.asarray(y2_ref),
                               rtol=1e-5, atol=1e-5)

    # 3) no-bias variant (kernel compiled without the bias operand/DMA)
    layer_nb = FCLayerPallas(input_size, hidden_size, bias=False,
                             nonlinearity=None, key=kw1)
    y3 = jax.block_until_ready(layer_nb(x))
    np.testing.assert_allclose(np.asarray(y3),
                               np.asarray(x @ layer_nb.weight_t),
                               rtol=1e-5, atol=1e-5)

    # 4) bf16 persistent weights + in-kernel x cast (f32 accumulation)
    layer_bf16 = FCLayerPallas(input_size, hidden_size, bias=True,
                               nonlinearity=None, key=kw1,
                               compute_dtype=jnp.bfloat16)
    y4 = jax.block_until_ready(layer_bf16(x))
    y4_ref = x @ layer_bf16.weight_t.astype(jnp.float32) + layer_bf16.bias
    np.testing.assert_allclose(np.asarray(y4), np.asarray(y4_ref),
                               rtol=5e-2, atol=5e-3)

    # 5) non-aligned shapes: partial M block + non-128 K/N, no wrapper padding
    layer_odd = FCLayerPallas(50, 100, bias=True, nonlinearity="relu", key=kw2)
    x_odd = jax.random.normal(kw3, (10, 50), dtype=jnp.float32)
    y5 = jax.block_until_ready(layer_odd(x_odd))
    y5_ref = jax.nn.relu(x_odd @ layer_odd.weight_t + layer_odd.bias)
    np.testing.assert_allclose(np.asarray(y5), np.asarray(y5_ref),
                               rtol=1e-5, atol=1e-5)

    # 6) forced general tiled path with K accumulation (explicit small tiles)
    kg1, kg2, kg3 = jax.random.split(kg, 3)
    xg = jax.random.normal(kg1, (16, 256), dtype=jnp.float32)
    wg = jax.random.normal(kg2, (256, 256), dtype=jnp.float32) * 0.05
    bg = jax.random.normal(kg3, (256,), dtype=jnp.float32) * 0.1
    yg = jax.block_until_ready(
        fc_layer(xg, wg, bg, nonlinearity=jax.nn.relu,
                 nonlinearity_elementwise=True, tm=8, tn=128, tk=128))
    yg_ref = jax.nn.relu(xg @ wg + bg)
    np.testing.assert_allclose(np.asarray(yg), np.asarray(yg_ref),
                               rtol=1e-4, atol=1e-4)

    print("KERNEL_OK")
</pallas_src>

<mosaic_0001>
module attributes {stable_mosaic.version = 11 : i64} {
  func.func @_fc_direct_kernel(%arg0: i32, %arg1: memref<8x32xf32, #tpu.memory_space<vmem>>, %arg2: memref<32x64xf32, #tpu.memory_space<vmem>>, %arg3: memref<1x64xf32, #tpu.memory_space<vmem>>, %arg4: memref<8x64xf32, #tpu.memory_space<vmem>>) attributes {dimension_semantics = [#tpu.dimension_semantics<parallel>], iteration_bounds = array<i64: 1>, scalar_prefetch = 0 : i64, scratch_operands = 0 : i64, tpu.core_type = #tpu.core_type<tc>, window_params = [{transform_indices = @transform_0, window_bounds = array<i64: 8, 32>}, {pipeline_mode = #tpu.pipeline_mode<synchronous>, transform_indices = @transform_1, window_bounds = array<i64: 32, 64>}, {pipeline_mode = #tpu.pipeline_mode<synchronous>, transform_indices = @transform_2, window_bounds = array<i64: 1, 64>}, {transform_indices = @transform_3, window_bounds = array<i64: 8, 64>}]} {
    %c0 = arith.constant 0 : index
    %c0_0 = arith.constant 0 : index
    %0 = vector.load %arg1[%c0, %c0_0] : memref<8x32xf32, #tpu.memory_space<vmem>>, vector<8x32xf32>
    %c0_1 = arith.constant 0 : index
    %c0_2 = arith.constant 0 : index
    %1 = vector.load %arg2[%c0_1, %c0_2] : memref<32x64xf32, #tpu.memory_space<vmem>>, vector<32x64xf32>
    %cst = arith.constant dense<0.000000e+00> : vector<8x64xf32>
    %2 = tpu.matmul %0, %1, %cst {dimension_numbers = #tpu.dot_dimension_numbers<[1], [0], [0], [1], [0, 0, 1, 1], [], []>} : vector<8x32xf32>, vector<32x64xf32>, vector<8x64xf32> -> vector<8x64xf32>
    %c0_3 = arith.constant 0 : index
    %c0_4 = arith.constant 0 : index
    %3 = vector.load %arg3[%c0_3, %c0_4] : memref<1x64xf32, #tpu.memory_space<vmem>>, vector<1x64xf32>
    %4 = vector.broadcast %3 : vector<1x64xf32> to vector<8x64xf32>
    %5 = arith.addf %2, %4 : vector<8x64xf32>
    %c0_5 = arith.constant 0 : index
    %c0_6 = arith.constant 0 : index
    %6 = vector.load %arg4[%c0_5, %c0_6] : memref<8x64xf32, #tpu.memory_space<vmem>>, vector<8x64xf32>
    tpu.vector_store %arg4[%c0_5, %c0_6], %5 {strides = array<i32>} : memref<8x64xf32, #tpu.memory_space<vmem>>, vector<8x64xf32>,
    return
  }
  func.func @transform_0(%arg0: i32) -> (i32, i32) {
    %c0_i32 = arith.constant 0 : i32
    %c0_i32_0 = arith.constant 0 : i32
    return %arg0, %c0_i32 : i32, i32
  }
  func.func @transform_1(%arg0: i32) -> (i32, i32) {
    %c0_i32 = arith.constant 0 : i32
    %c0_i32_0 = arith.constant 0 : i32
    %c0_i32_1 = arith.constant 0 : i32
    return %c0_i32, %c0_i32_0 : i32, i32
  }
  func.func @transform_2(%arg0: i32) -> (i32, i32) {
    %c0_i32 = arith.constant 0 : i32
    %c0_i32_0 = arith.constant 0 : i32
    %c0_i32_1 = arith.constant 0 : i32
    return %c0_i32, %c0_i32_0 : i32, i32
  }
  func.func @transform_3(%arg0: i32) -> (i32, i32) {
    %c0_i32 = arith.constant 0 : i32
    %c0_i32_0 = arith.constant 0 : i32
    return %arg0, %c0_i32 : i32, i32
  }
}

</mosaic_0001>

<bundles_post_ra>
// kernel: tpu_custom_call.1
= control target key start
LH: loop header
LB: loop body
LE: loop exit
PB: predicated region body
PF: predicated region fallthrough
CT: control target
= control target key end

     0   :  { %8 = vsyncpa [#allocation3], 0  ;;  %s220_s0 = inlined_call_operand.hbm [shape: f32[8,32], index: 0, kind: input, shape index: {}]   ;;  %s221_s1 = inlined_call_operand.hbm [shape: f32[32,64], index: 1, kind: input, shape index: {}]   ;;  %s222_s2 = inlined_call_operand.vmem [shape: f32[1,64], index: 2, kind: input, shape index: {}]   ;;  %s223_s3 = inlined_call_operand.hbm [shape: f32[8,64], index: 3, kind: output, shape index: {}]  }
   0x1   :  { %9 = vsyncpa [#allocation6], 0 }
   0x2   :  { %10 = vsyncpa [#allocation4], 0  ;;  %s16_s14 = sshll.u32 %s220_s0, 4  ;;  %s183_s15 = smov [#allocation2]   ;;  %s17_s14 = int_to_ptr.hbm [resolvable:$true] %s16_s14 }
   0x3   :  { %s18_s16 = sshll.u32 %s183_s15, 4  ;;  %s26_s19 = sshll.u32 %s221_s1, 4  ;;  %s19_s16 = int_to_ptr.vmem [resolvable:$true] %s18_s16  ;;  %s27_s19 = int_to_ptr.hbm [resolvable:$true] %s26_s19 }
   0x4   :  { %21 = dma.hbm_to_vmem [thread:$0]  %s17_s14, 128, %s19_s16, [#allocation3]  }
   0x5   :  { %s184_s20 = smov [#allocation5]   ;;  %s185_s22 = smov 128  }
   0x6   :  { %s28_s21 = sshll.u32 %s184_s20, 4  ;;  %s186_s23 = smov 8   ;;  %s29_s21 = int_to_ptr.vmem [resolvable:$true] %s28_s21 }
   0x7   :  { %34 = dma.hbm_to_vmem [thread:$0]  %s27_s19, 512, %s29_s21, [#allocation6], %s185_s22, %s185_s22, %s186_s23  }
   0x8   :  { %177 = dma.done.wait [#allocation3], 128  }
   0x9   :  { %178 = vsyncadd [#allocation3], 4294967168 }
   0xa   :  { %179 = dma.done.wait [#allocation6], 512  }
   0xb   :  { %180 = vsyncadd [#allocation6], 4294966784  ;;  %v49_v0 = vld [vmem:[#allocation5 + $0x18] sm:$0xff]  ;;  %v48_v1 = vld [vmem:[#allocation5 + $0x10] sm:$0xff]  ;;  %vm54_vm0 = vcmask 261120   ;;  %s187_s24 = smov [#allocation7]  }
   0xc   :  { %70 = vmatpush.msra.mxu0 %v49_v0  ;;  %v47_v2 = vld [vmem:[#allocation5 + $0x8] sm:$0xff]  ;;  %v46_v3 = vld [vmem:[#allocation5] sm:$0xff]  ;;  %v45_v4 = vld [vmem:[#allocation2] sm:$0xff]  ;;  %s85_s25 = sshll.u32 %s187_s24, 4  ;;  %s87_s28 = sshll.u32 %s223_s3, 4  ;;  %vm78_vm1 = vcmask 523264   ;;  %s86_s25 = int_to_ptr.vmem [resolvable:$true] %s85_s25  ;;  %s88_s28 = int_to_ptr.hbm [resolvable:$true] %s87_s28 }
   0xd   :  { %v104_v5 = vld [vmem:[%s222_s2] ss:$0 sm:$0xff] }
   0xe   :  { %71 = vmatpush.msra.mxu0 %v48_v1 }
  0x10   :  { %72 = vmatpush.msra.mxu0 %v47_v2 }
  0x12   :  { %73 = vmatpush.msra.mxu0 %v46_v3 }
  0x13   :  { %98 = vmatmul.msk.f32.vlgmr.msra.gmra.mxu0 %vm54_vm0, %v45_v4 }
  0x90   :  { %v75_v6 = vpop.f32.mrf.mxu0 }
  0x91   :  { %v76_v7 = vadd.f32 %v104_v5, %v75_v6 }
  0x93   :  { %79 = vst.msk [vmem:[#allocation7] sm:$0xff] %vm78_vm1, %v76_v7 }
  0x94   :  { %90 = dma.vmem_to_hbm [thread:$0]  %s86_s25, 128, %s88_s28, [#allocation4]  }
  0x95   :  { %181 = dma.done.wait [#allocation4], 128  }
  0x96   :  { %182 = vsyncadd [#allocation4], 4294967168 }
  0x97   :  { %95 = vsyncpa [#allocation3], 1 }
  0x98   :  { %96 = vsyncpa [#allocation6], 1 }
  0x99   :  { %97 = vsyncpa [#allocation4], 1 }

</bundles_post_ra>
